<compile_context>
chip_gen: v5e
topology: v5e:2x2
jax: 0.10.0
libtpu: 0.0.40
codegen_flags: <defaults>
</compile_context>

<pallas_src>
import jax
import jax.numpy as jnp
from jax.experimental import pallas as pl
from jax.experimental.pallas import tpu as pltpu

jax.config.update("jax_default_matmul_precision", "highest")

# ---------------- model hyper-parameters (small, consistent with module) ----
EMBED_DIM = 8                        # args.embed_dim
ATTR_FNUM = 3
ITEM_FNUM = 1 + ATTR_FNUM
ITM_EMB_DIM = ITEM_FNUM * EMBED_DIM  # 32 (only feeds the unused item_emb input)
MAX_HIST_LEN = 8                     # "user" graph nodes
MAX_LIST_LEN = 8                     # "item" graph nodes (= rerank list len)
N_LAYERS = 2                         # args.n_layers
B = 2                                # batch
NEG_SLOPE = 0.01                     # F.leaky_relu default slope
L2_EPS = 1e-12                       # F.normalize default eps

ITEM_NUM = 50
ATTR_NUM = 20

E = EMBED_DIM
H = MAX_HIST_LEN
L = MAX_LIST_LEN
N = H + L                            # graph nodes

# structured normalized adjacency D^-1/2 (A + I) D^-1/2 (bipartite + self loops)
DU = (L + 1) ** -0.5                 # user-node degree scale
DI = (H + 1) ** -0.5                 # item-node degree scale
DU2, DI2, DUDI = DU * DU, DI * DI, DU * DI

# ---------------- packed input slab layout (fp32, (SLAB_ROWS, 2E)) ----------
SLAB_COLS = 2 * E                    # 16
EMB_R0 = 0                           # rows [0, N)        cols [0, E)  : all_emb
W_R0 = N                             # rows [16+32l, ...) : blockdiag(W1_l^T, W2_l^T)
BIAS_R0 = W_R0 + N_LAYERS * 2 * E    # row 48+l           : [b1_l | b2_l]
LBL_R0 = BIAS_R0 + N_LAYERS          # rows [50, 50+B)    cols [0, L)  : labels (f32)
SLAB_ROWS = ((LBL_R0 + B + 7) // 8) * 8   # 56

OUT_ROWS, OUT_LANES = 8, 128         # lane-dense padded output block


# --------------------------------- kernel -----------------------------------
def ngcf_kernel(slab_ref, out_ref):
    x = slab_ref[EMB_R0:EMB_R0 + N, 0:E]                       # (N, E) all_embeddings

    # hoisted constants for the structured adjacency
    is_user = jax.lax.broadcasted_iota(jnp.int32, (N, E), 0) < H
    diag_scale = jnp.where(is_user, DU2, DI2)                  # (N, E)

    acc = x                                                    # running sum of embeddings_list

    for l in range(N_LAYERS):
        r = W_R0 + l * 2 * E
        W = slab_ref[r:r + 2 * E, :]                           # (2E, 2E) blockdiag(W1^T, W2^T)
        b = slab_ref[BIAS_R0 + l:BIAS_R0 + l + 1, :]           # (1, 2E)  [b1 | b2]

        # side = norm_adj @ x, exploiting the constant bipartite+self-loop structure
        su = jnp.sum(x[:H, :], axis=0, keepdims=True)          # (1, E) sum over user nodes
        si = jnp.sum(x[H:, :], axis=0, keepdims=True)          # (1, E) sum over item nodes
        opp = jnp.where(is_user,
                        jnp.broadcast_to(si, (N, E)),
                        jnp.broadcast_to(su, (N, E)))
        side = diag_scale * x + DUDI * opp                     # (N, E)

        # fused W1/W2: one MXU push on [side | x*side] @ blockdiag(W1^T, W2^T)
        lhs = jnp.concatenate([side, x * side], axis=1)        # (N, 2E)
        h = jnp.dot(lhs, W, preferred_element_type=jnp.float32) + b
        h = jnp.where(h > 0, h, NEG_SLOPE * h)                 # leaky_relu
        x = h[:, 0:E] + h[:, E:2 * E]                          # sum_emb + bi_emb
        # (dropout: training-only, no-op in forward/eval)

        # F.normalize(x, p=2, dim=1) via a single EUP rsqrt
        sumsq = jnp.sum(x * x, axis=1, keepdims=True)
        x = x * jax.lax.rsqrt(jnp.maximum(sumsq, L2_EPS * L2_EPS))
        acc = acc + x

    mean_emb = acc * (1.0 / (N_LAYERS + 1))                    # mean over embeddings_list
    item = mean_emb[H:, :]                                     # (L, E)
    u_mean = jnp.mean(mean_emb[:H, :], axis=0, keepdims=True)  # (1, E) (mean commutes w/ matmul)

    sc = jax.lax.dot_general(u_mean, item, (((1,), (1,)), ((), ())),
                             preferred_element_type=jnp.float32)   # (1, L) == mean_u(user@item^T)
    p = jax.nn.sigmoid(sc)                                     # scores (first sigmoid)
    logits = jax.nn.sigmoid(p)                                 # get_rerank_output second sigmoid

    # BCE loss on p vs labels (PyTorch BCELoss semantics, log clamped at -100)
    y = slab_ref[LBL_R0:LBL_R0 + B, 0:L]                       # (B, L) labels as f32
    log_p = jnp.maximum(jnp.log(p), -100.0)
    log_1mp = jnp.maximum(jnp.log(1.0 - p), -100.0)
    bce = y * log_p + (1.0 - y) * log_1mp                      # (B, L) via broadcast
    s = jnp.sum(jnp.sum(bce, axis=1, keepdims=True), axis=0, keepdims=True)   # (1, 1)
    loss_row = jnp.broadcast_to(-s * (1.0 / (B * L)), (1, L))  # scalar loss in lane 0

    # single unmasked full-tile store of a lane-dense (8, 128) block
    rows = jnp.concatenate(
        [p, logits, loss_row, jnp.zeros((OUT_ROWS - 3, L), jnp.float32)], axis=0)   # (8, L)
    blk = jnp.concatenate(
        [rows, jnp.zeros((OUT_ROWS, OUT_LANES - L), jnp.float32)], axis=1)          # (8, 128)
    out_ref[...] = blk


# ------------------------------- wrapper -------------------------------------
def ngcf_pallas(slab):
    vmem = pl.BlockSpec(memory_space=pltpu.MemorySpace.VMEM)
    return pl.pallas_call(
        ngcf_kernel,
        out_shape=jax.ShapeDtypeStruct((OUT_ROWS, OUT_LANES), jnp.float32),
        in_specs=[vmem],
        out_specs=vmem,
    )(slab)


@jax.jit
def ngcf_forward(slab):
    blk = ngcf_pallas(slab)
    scores = jnp.broadcast_to(blk[0:1, 0:L], (B, L))   # sigmoid(scores), identical per row
    logits = jnp.broadcast_to(blk[1:2, 0:L], (B, L))   # outputs['logits'] (second sigmoid)
    loss = blk[2, 0]
    return scores, logits, loss


# ------------------------------- parameters ----------------------------------
def init_params(key):
    ks = jax.random.split(key, 2 + 4 * N_LAYERS)
    user_emb = jax.random.normal(ks[0], (H, E), jnp.float32)       # torch.randn params
    item_emb = jax.random.normal(ks[1], (L, E), jnp.float32)
    all_emb = jnp.concatenate([user_emb, item_emb], axis=0)        # (N, E)

    w_scale = 1.0 / jnp.sqrt(float(E))
    W1t, b1, W2t, b2 = [], [], [], []
    for l in range(N_LAYERS):
        k0, k1, k2, k3 = ks[2 + 4 * l: 6 + 4 * l]
        W1t.append(w_scale * jax.random.normal(k0, (E, E), jnp.float32))   # (in, out)
        b1.append(w_scale * jax.random.normal(k1, (E,), jnp.float32))
        W2t.append(w_scale * jax.random.normal(k2, (E, E), jnp.float32))
        b2.append(w_scale * jax.random.normal(k3, (E,), jnp.float32))
    return all_emb, W1t, b1, W2t, b2


def pack_inputs(all_emb, W1t, b1, W2t, b2, labels):
    """Pack embeddings, block-diagonal layer weights, biases and labels into one slab."""
    slab = jnp.zeros((SLAB_ROWS, SLAB_COLS), jnp.float32)
    slab = slab.at[EMB_R0:EMB_R0 + N, 0:E].set(all_emb)
    for l in range(N_LAYERS):
        r = W_R0 + l * 2 * E
        slab = slab.at[r:r + E, 0:E].set(W1t[l])                   # top-left block
        slab = slab.at[r + E:r + 2 * E, E:2 * E].set(W2t[l])       # bottom-right block
        slab = slab.at[BIAS_R0 + l, 0:E].set(b1[l])
        slab = slab.at[BIAS_R0 + l, E:2 * E].set(b2[l])
    slab = slab.at[LBL_R0:LBL_R0 + B, 0:L].set(labels.astype(jnp.float32))
    return slab


# --------------------------- pure-JAX reference ------------------------------
def _ref_norm_adj():
    adj = jnp.zeros((N, N), jnp.float32)
    adj = adj.at[:H, H:].set(1.0)
    adj = adj.at[H:, :H].set(1.0)
    adj = adj + jnp.eye(N, dtype=jnp.float32)
    deg = jnp.sum(adj, axis=1)
    dinv = jnp.power(deg, -0.5)
    dinv = jnp.where(jnp.isinf(dinv), 0.0, dinv)
    return (dinv[:, None] * adj) * dinv[None, :]


def _ref_forward(all_emb, W1t, b1, W2t, b2, labels):
    def leaky(v):
        return jnp.where(v > 0, v, NEG_SLOPE * v)

    norm_adj = _ref_norm_adj()
    x = all_emb
    emb_list = [x]
    for l in range(N_LAYERS):
        side = norm_adj @ x
        s = leaky(side @ W1t[l] + b1[l][None, :])
        bi = leaky((x * side) @ W2t[l] + b2[l][None, :])
        x = s + bi
        nrm = jnp.sqrt(jnp.sum(x * x, axis=1, keepdims=True))
        x = x / jnp.maximum(nrm, L2_EPS)
        emb_list.append(x)
    mean_emb = jnp.mean(jnp.stack(emb_list, axis=0), axis=0)
    user, item = mean_emb[:H], mean_emb[H:]
    sc = jnp.mean(user @ item.T, axis=0)                           # (L,)
    scores = jnp.broadcast_to(jax.nn.sigmoid(sc)[None, :], (B, L))
    logits = jax.nn.sigmoid(scores)
    y = labels.astype(jnp.float32)
    log_p = jnp.maximum(jnp.log(scores), -100.0)
    log_1mp = jnp.maximum(jnp.log(1.0 - scores), -100.0)
    loss = -jnp.mean(y * log_p + (1.0 - y) * log_1mp)
    return scores, logits, loss


# --------------------------------- main ---------------------------------------
if __name__ == "__main__":
    key = jax.random.PRNGKey(0)
    k_emb, k_attr, k_iid, k_aid, k_lbl, k_par = jax.random.split(key, 6)

    # TODO(synk): process_input embedding gathers stay in plain JAX; NGCF.forward
    # only uses their result for batch_size, so they never enter the score.
    item_table = 0.1 * jax.random.normal(k_emb, (ITEM_NUM + 1, EMBED_DIM), jnp.float32)
    attr_table = 0.1 * jax.random.normal(k_attr, (ATTR_NUM + 1, EMBED_DIM), jnp.float32)
    iid_list = jax.random.randint(k_iid, (B, L), 0, ITEM_NUM + 1)
    aid_list = jax.random.randint(k_aid, (B, L, ATTR_FNUM), 0, ATTR_NUM + 1)
    labels = jax.random.bernoulli(k_lbl, 0.5, (B, L)).astype(jnp.int32)

    iid_emb = item_table[iid_list]                                     # (B, L, E)
    attr_emb = attr_table[aid_list].reshape(B, L, EMBED_DIM * ATTR_FNUM)
    item_emb_inp = jnp.concatenate([iid_emb, attr_emb], axis=-1)       # (B, L, 32), unused by NGCF math
    batch_size = item_emb_inp.shape[0]
    assert batch_size == B

    all_emb, W1t, b1, W2t, b2 = init_params(k_par)
    slab = pack_inputs(all_emb, W1t, b1, W2t, b2, labels)

    # Pallas kernel: NGCF propagation + scoring + sigmoid + rerank output (logits, BCE loss)
    scores, logits, loss = ngcf_forward(slab)
    (scores, logits, loss) = jax.block_until_ready((scores, logits, loss))

    # correctness check against pure-JAX reference
    ref_scores, ref_logits, ref_loss = _ref_forward(all_emb, W1t, b1, W2t, b2, labels)
    assert jnp.allclose(scores, ref_scores, atol=1e-3, rtol=1e-3), "scores mismatch"
    assert jnp.allclose(logits, ref_logits, atol=1e-3, rtol=1e-3), "logits mismatch"
    assert jnp.allclose(loss, ref_loss, atol=1e-3, rtol=1e-3), "loss mismatch"

    outputs = {'logits': logits, 'labels': labels, 'loss': loss}   # mirrors get_rerank_output
    jax.block_until_ready(outputs['loss'])

    print("KERNEL_OK")
</pallas_src>

<mosaic_0001>
module attributes {stable_mosaic.version = 11 : i64} {
  func.func @ngcf_kernel(%arg0: memref<56x16xf32, #tpu.memory_space<vmem>>, %arg1: memref<8x128xf32, #tpu.memory_space<vmem>>) attributes {dimension_semantics = [], scalar_prefetch = 0 : i64, scratch_operands = 0 : i64, tpu.core_type = #tpu.core_type<tc>} {
    %c0 = arith.constant 0 : index
    %c0_0 = arith.constant 0 : index
    %0 = vector.load %arg0[%c0, %c0_0] : memref<56x16xf32, #tpu.memory_space<vmem>>, vector<16x8xf32>
    %1 = tpu.iota {dimensions = array<i32: 0>} : vector<16x8xi32>
    %c8_i32 = arith.constant 8 : i32
    %2 = vector.broadcast %c8_i32 : i32 to vector<16x8xi32>
    %3 = arith.cmpi slt, %1, %2 : vector<16x8xi32>
    %cst = arith.constant 0.111111112 : f32
    %cst_1 = arith.constant 0.111111112 : f32
    %4 = vector.broadcast %cst : f32 to vector<16x8xf32>
    %5 = vector.broadcast %cst_1 : f32 to vector<16x8xf32>
    %6 = arith.select %3, %4, %5 : vector<16x8xi1>, vector<16x8xf32>
    %c16 = arith.constant 16 : index
    %c0_2 = arith.constant 0 : index
    %7 = vector.load %arg0[%c16, %c0_2] : memref<56x16xf32, #tpu.memory_space<vmem>>, vector<16x16xf32>
    %c48 = arith.constant 48 : index
    %c0_3 = arith.constant 0 : index
    %8 = vector.load %arg0[%c48, %c0_3] : memref<56x16xf32, #tpu.memory_space<vmem>>, vector<1x16xf32>
    %9 = vector.extract_strided_slice %0 {offsets = [0, 0], sizes = [8, 8], strides = [1, 1]} : vector<16x8xf32> to vector<8x8xf32>
    %cst_4 = arith.constant dense<0.000000e+00> : vector<8xf32>
    %10 = vector.multi_reduction <add>, %9, %cst_4 [0] : vector<8x8xf32> to vector<8xf32>
    %11 = vector.shape_cast %10 : vector<8xf32> to vector<1x8xf32>
    %12 = vector.extract_strided_slice %0 {offsets = [8, 0], sizes = [8, 8], strides = [1, 1]} : vector<16x8xf32> to vector<8x8xf32>
    %cst_5 = arith.constant dense<0.000000e+00> : vector<8xf32>
    %13 = vector.multi_reduction <add>, %12, %cst_5 [0] : vector<8x8xf32> to vector<8xf32>
    %14 = vector.shape_cast %13 : vector<8xf32> to vector<1x8xf32>
    %15 = vector.shape_cast %14 : vector<1x8xf32> to vector<1x8xf32>
    %16 = vector.broadcast %15 : vector<1x8xf32> to vector<16x8xf32>
    %17 = vector.shape_cast %11 : vector<1x8xf32> to vector<1x8xf32>
    %18 = vector.broadcast %17 : vector<1x8xf32> to vector<16x8xf32>
    %19 = arith.select %3, %16, %18 : vector<16x8xi1>, vector<16x8xf32>
    %20 = arith.mulf %6, %0 : vector<16x8xf32>
    %cst_6 = arith.constant 0.111111112 : f32
    %21 = vector.broadcast %cst_6 : f32 to vector<16x8xf32>
    %22 = arith.mulf %21, %19 : vector<16x8xf32>
    %23 = arith.addf %20, %22 : vector<16x8xf32>
    %24 = arith.mulf %0, %23 : vector<16x8xf32>
    %25 = tpu.concatenate %23, %24 in 1 : vector<16x8xf32>, vector<16x8xf32> -> vector<16x16xf32>
    %cst_7 = arith.constant dense<0.000000e+00> : vector<16x16xf32>
    %26 = tpu.matmul %25, %7, %cst_7 {dimension_numbers = #tpu.dot_dimension_numbers<[1], [0], [0], [1], [0, 0, 1, 1], [], []>, precision = #tpu.contract_precision<fp32>} : vector<16x16xf32>, vector<16x16xf32>, vector<16x16xf32> -> vector<16x16xf32>
    %27 = vector.broadcast %8 : vector<1x16xf32> to vector<16x16xf32>
    %28 = arith.addf %26, %27 : vector<16x16xf32>
    %cst_8 = arith.constant 0.000000e+00 : f32
    %29 = vector.broadcast %cst_8 : f32 to vector<16x16xf32>
    %30 = arith.cmpf ogt, %28, %29 : vector<16x16xf32>
    %cst_9 = arith.constant 0.00999999977 : f32
    %31 = vector.broadcast %cst_9 : f32 to vector<16x16xf32>
    %32 = arith.mulf %31, %28 : vector<16x16xf32>
    %33 = arith.select %30, %28, %32 : vector<16x16xi1>, vector<16x16xf32>
    %34 = vector.extract_strided_slice %33 {offsets = [0, 0], sizes = [16, 8], strides = [1, 1]} : vector<16x16xf32> to vector<16x8xf32>
    %35 = vector.extract_strided_slice %33 {offsets = [0, 8], sizes = [16, 8], strides = [1, 1]} : vector<16x16xf32> to vector<16x8xf32>
    %36 = arith.addf %34, %35 : vector<16x8xf32>
    %37 = arith.mulf %36, %36 : vector<16x8xf32>
    %cst_10 = arith.constant dense<0.000000e+00> : vector<16xf32>
    %38 = vector.multi_reduction <add>, %37, %cst_10 [1] : vector<16x8xf32> to vector<16xf32>
    %39 = vector.shape_cast %38 : vector<16xf32> to vector<16x1xf32>
    %cst_11 = arith.constant 1.000000e-24 : f32
    %40 = vector.broadcast %cst_11 : f32 to vector<16x1xf32>
    %41 = arith.maximumf %39, %40 : vector<16x1xf32>
    %42 = math.rsqrt %41 : vector<16x1xf32>
    %43 = vector.broadcast %42 : vector<16x1xf32> to vector<16x8xf32>
    %44 = arith.mulf %36, %43 : vector<16x8xf32>
    %45 = arith.addf %0, %44 : vector<16x8xf32>
    %c32 = arith.constant 32 : index
    %c0_12 = arith.constant 0 : index
    %46 = vector.load %arg0[%c32, %c0_12] : memref<56x16xf32, #tpu.memory_space<vmem>>, vector<16x16xf32>
    %c49 = arith.constant 49 : index
    %c0_13 = arith.constant 0 : index
    %47 = vector.load %arg0[%c49, %c0_13] : memref<56x16xf32, #tpu.memory_space<vmem>>, vector<1x16xf32>
    %48 = vector.extract_strided_slice %44 {offsets = [0, 0], sizes = [8, 8], strides = [1, 1]} : vector<16x8xf32> to vector<8x8xf32>
    %cst_14 = arith.constant dense<0.000000e+00> : vector<8xf32>
    %49 = vector.multi_reduction <add>, %48, %cst_14 [0] : vector<8x8xf32> to vector<8xf32>
    %50 = vector.shape_cast %49 : vector<8xf32> to vector<1x8xf32>
    %51 = vector.extract_strided_slice %44 {offsets = [8, 0], sizes = [8, 8], strides = [1, 1]} : vector<16x8xf32> to vector<8x8xf32>
    %cst_15 = arith.constant dense<0.000000e+00> : vector<8xf32>
    %52 = vector.multi_reduction <add>, %51, %cst_15 [0] : vector<8x8xf32> to vector<8xf32>
    %53 = vector.shape_cast %52 : vector<8xf32> to vector<1x8xf32>
    %54 = vector.shape_cast %53 : vector<1x8xf32> to vector<1x8xf32>
    %55 = vector.broadcast %54 : vector<1x8xf32> to vector<16x8xf32>
    %56 = vector.shape_cast %50 : vector<1x8xf32> to vector<1x8xf32>
    %57 = vector.broadcast %56 : vector<1x8xf32> to vector<16x8xf32>
    %58 = arith.select %3, %55, %57 : vector<16x8xi1>, vector<16x8xf32>
    %59 = arith.mulf %6, %44 : vector<16x8xf32>
    %cst_16 = arith.constant 0.111111112 : f32
    %60 = vector.broadcast %cst_16 : f32 to vector<16x8xf32>
    %61 = arith.mulf %60, %58 : vector<16x8xf32>
    %62 = arith.addf %59, %61 : vector<16x8xf32>
    %63 = arith.mulf %44, %62 : vector<16x8xf32>
    %64 = tpu.concatenate %62, %63 in 1 : vector<16x8xf32>, vector<16x8xf32> -> vector<16x16xf32>
    %cst_17 = arith.constant dense<0.000000e+00> : vector<16x16xf32>
    %65 = tpu.matmul %64, %46, %cst_17 {dimension_numbers = #tpu.dot_dimension_numbers<[1], [0], [0], [1], [0, 0, 1, 1], [], []>, precision = #tpu.contract_precision<fp32>} : vector<16x16xf32>, vector<16x16xf32>, vector<16x16xf32> -> vector<16x16xf32>
    %66 = vector.broadcast %47 : vector<1x16xf32> to vector<16x16xf32>
    %67 = arith.addf %65, %66 : vector<16x16xf32>
    %cst_18 = arith.constant 0.000000e+00 : f32
    %68 = vector.broadcast %cst_18 : f32 to vector<16x16xf32>
    %69 = arith.cmpf ogt, %67, %68 : vector<16x16xf32>
    %cst_19 = arith.constant 0.00999999977 : f32
    %70 = vector.broadcast %cst_19 : f32 to vector<16x16xf32>
    %71 = arith.mulf %70, %67 : vector<16x16xf32>
    %72 = arith.select %69, %67, %71 : vector<16x16xi1>, vector<16x16xf32>
    %73 = vector.extract_strided_slice %72 {offsets = [0, 0], sizes = [16, 8], strides = [1, 1]} : vector<16x16xf32> to vector<16x8xf32>
    %74 = vector.extract_strided_slice %72 {offsets = [0, 8], sizes = [16, 8], strides = [1, 1]} : vector<16x16xf32> to vector<16x8xf32>
    %75 = arith.addf %73, %74 : vector<16x8xf32>
    %76 = arith.mulf %75, %75 : vector<16x8xf32>
    %cst_20 = arith.constant dense<0.000000e+00> : vector<16xf32>
    %77 = vector.multi_reduction <add>, %76, %cst_20 [1] : vector<16x8xf32> to vector<16xf32>
    %78 = vector.shape_cast %77 : vector<16xf32> to vector<16x1xf32>
    %cst_21 = arith.constant 1.000000e-24 : f32
    %79 = vector.broadcast %cst_21 : f32 to vector<16x1xf32>
    %80 = arith.maximumf %78, %79 : vector<16x1xf32>
    %81 = math.rsqrt %80 : vector<16x1xf32>
    %82 = vector.broadcast %81 : vector<16x1xf32> to vector<16x8xf32>
    %83 = arith.mulf %75, %82 : vector<16x8xf32>
    %84 = arith.addf %45, %83 : vector<16x8xf32>
    %cst_22 = arith.constant 0.333333343 : f32
    %85 = vector.broadcast %cst_22 : f32 to vector<16x8xf32>
    %86 = arith.mulf %84, %85 : vector<16x8xf32>
    %87 = vector.extract_strided_slice %86 {offsets = [8, 0], sizes = [8, 8], strides = [1, 1]} : vector<16x8xf32> to vector<8x8xf32>
    %88 = vector.extract_strided_slice %86 {offsets = [0, 0], sizes = [8, 8], strides = [1, 1]} : vector<16x8xf32> to vector<8x8xf32>
    %cst_23 = arith.constant dense<0.000000e+00> : vector<8xf32>
    %89 = vector.multi_reduction <add>, %88, %cst_23 [0] : vector<8x8xf32> to vector<8xf32>
    %90 = vector.shape_cast %89 : vector<8xf32> to vector<1x8xf32>
    %cst_24 = arith.constant 8.000000e+00 : f32
    %91 = vector.broadcast %cst_24 : f32 to vector<1x8xf32>
    %92 = arith.divf %90, %91 : vector<1x8xf32>
    %cst_25 = arith.constant dense<0.000000e+00> : vector<1x8xf32>
    %93 = tpu.matmul %92, %87, %cst_25 {dimension_numbers = #tpu.dot_dimension_numbers<[1], [1], [0], [0], [0, 0, 1, 0], [], []>, precision = #tpu.contract_precision<fp32>} : vector<1x8xf32>, vector<8x8xf32>, vector<1x8xf32> -> vector<1x8xf32>
    %94 = arith.negf %93 : vector<1x8xf32>
    %95 = math.exp %94 : vector<1x8xf32>
    %cst_26 = arith.constant 1.000000e+00 : f32
    %96 = vector.broadcast %cst_26 : f32 to vector<1x8xf32>
    %97 = arith.addf %96, %95 : vector<1x8xf32>
    %98 = arith.divf %96, %97 : vector<1x8xf32>
    %99 = arith.negf %98 : vector<1x8xf32>
    %100 = math.exp %99 : vector<1x8xf32>
    %cst_27 = arith.constant 1.000000e+00 : f32
    %101 = vector.broadcast %cst_27 : f32 to vector<1x8xf32>
    %102 = arith.addf %101, %100 : vector<1x8xf32>
    %103 = arith.divf %101, %102 : vector<1x8xf32>
    %c50 = arith.constant 50 : index
    %c0_28 = arith.constant 0 : index
    %104 = vector.load %arg0[%c50, %c0_28] : memref<56x16xf32, #tpu.memory_space<vmem>>, vector<2x8xf32>
    %105 = math.log %98 : vector<1x8xf32>
    %cst_29 = arith.constant -1.000000e+02 : f32
    %106 = vector.broadcast %cst_29 : f32 to vector<1x8xf32>
    %107 = arith.maximumf %105, %106 : vector<1x8xf32>
    %cst_30 = arith.constant 1.000000e+00 : f32
    %108 = vector.broadcast %cst_30 : f32 to vector<1x8xf32>
    %109 = arith.subf %108, %98 : vector<1x8xf32>
    %110 = math.log %109 : vector<1x8xf32>
    %cst_31 = arith.constant -1.000000e+02 : f32
    %111 = vector.broadcast %cst_31 : f32 to vector<1x8xf32>
    %112 = arith.maximumf %110, %111 : vector<1x8xf32>
    %113 = vector.broadcast %107 : vector<1x8xf32> to vector<2x8xf32>
    %114 = arith.mulf %104, %113 : vector<2x8xf32>
    %cst_32 = arith.constant 1.000000e+00 : f32
    %115 = vector.broadcast %cst_32 : f32 to vector<2x8xf32>
    %116 = arith.subf %115, %104 : vector<2x8xf32>
    %117 = vector.broadcast %112 : vector<1x8xf32> to vector<2x8xf32>
    %118 = arith.mulf %116, %117 : vector<2x8xf32>
    %119 = arith.addf %114, %118 : vector<2x8xf32>
    %cst_33 = arith.constant dense<0.000000e+00> : vector<2xf32>
    %120 = vector.multi_reduction <add>, %119, %cst_33 [1] : vector<2x8xf32> to vector<2xf32>
    %121 = vector.shape_cast %120 : vector<2xf32> to vector<2x1xf32>
    %cst_34 = arith.constant dense<0.000000e+00> : vector<1xf32>
    %122 = vector.multi_reduction <add>, %121, %cst_34 [0] : vector<2x1xf32> to vector<1xf32>
    %123 = vector.shape_cast %122 : vector<1xf32> to vector<1x1xf32>
    %cst_35 = arith.constant 0.000000e+00 : f32
    %124 = vector.broadcast %cst_35 : f32 to vector<1x1xf32>
    %125 = arith.subf %124, %123 : vector<1x1xf32>
    %cst_36 = arith.constant 6.250000e-02 : f32
    %126 = vector.broadcast %cst_36 : f32 to vector<1x1xf32>
    %127 = arith.mulf %125, %126 : vector<1x1xf32>
    %128 = vector.shape_cast %127 : vector<1x1xf32> to vector<1x1xf32>
    %129 = vector.broadcast %128 : vector<1x1xf32> to vector<1x8xf32>
    %cst_37 = arith.constant 0.000000e+00 : f32
    %130 = vector.broadcast %cst_37 : f32 to vector<5x8xf32>
    %131 = tpu.concatenate %98, %103, %129, %130 in 0 : vector<1x8xf32>, vector<1x8xf32>, vector<1x8xf32>, vector<5x8xf32> -> vector<8x8xf32>
    %cst_38 = arith.constant 0.000000e+00 : f32
    %132 = vector.broadcast %cst_38 : f32 to vector<8x120xf32>
    %133 = tpu.concatenate %131, %132 in 1 : vector<8x8xf32>, vector<8x120xf32> -> vector<8x128xf32>
    %c0_39 = arith.constant 0 : index
    %c0_40 = arith.constant 0 : index
    %134 = vector.load %arg1[%c0_39, %c0_40] : memref<8x128xf32, #tpu.memory_space<vmem>>, vector<8x128xf32>
    tpu.vector_store %arg1[%c0_39, %c0_40], %133 {strides = array<i32>} : memref<8x128xf32, #tpu.memory_space<vmem>>, vector<8x128xf32>,
    return
  }
}

</mosaic_0001>

<bundles_post_ra>
// kernel: ngcf_forward.1
= control target key start
LH: loop header
LB: loop body
LE: loop exit
PB: predicated region body
PF: predicated region fallthrough
CT: control target
= control target key end

     0   :  { %vm18_vm0 = vcmask 64512   ;;  %s863_s10 = smov 8   ;;  %vm54_vm1 = vcmask 130048   ;;  %s864_s17 = smov 120   ;;  %s960_s0 = inlined_call_operand.vmem [shape: f32[56,16], index: 0, kind: input, shape index: {}]   ;;  %s961_s1 = inlined_call_operand.vmem [shape: f32[8,128], index: 1, kind: output, shape index: {}]  }
   0x1   :  { %v879_v0 = vld [vmem:[%s960_s0] sm:$0xff]  ;;  %v884_v1 = vld [vmem:[%s960_s0 + $0x8] sm:$0xff]  ;;  %v16_v24 = vld [vmem:[%s960_s0 + $0x18] sm:$0xff] }
   0x2   :  { %v26_v2 = vsel %vm18_vm0, %v884_v1, 0.0  ;;  %v19_v3 = vsel %vm18_vm0, %v879_v0, 0.0  ;;  %v35_v15 = vmul.f32 0.11111111, %v879_v0  ;;  %v36_v19 = vmul.f32 0.11111111, %v884_v1 }
   0x3   :  { %v27_v4 = vrot.slane %v26_v2, 4  ;;  %v20_v5 = vrot.slane %v19_v3, 4  ;;  %v75_v25 = vand.u32 4294901760, %v16_v24  ;;  %v15_v26 = vld [vmem:[%s960_s0 + $0x10] sm:$0xff] }
   0x4   :  { %v77_v28 = vand.u32 4294901760, %v15_v26  ;;  %v839_v57 = vld [vmem:[%s960_s0 + $0x30] ss:$0 sm:$0xff] }
   0x5   :  { %v28_v6 = vadd.f32 %v27_v4, %v26_v2  ;;  %v21_v7 = vadd.f32 %v20_v5, %v19_v3  ;;  %v111_v27 = vsub.f32 %v16_v24, %v75_v25  ;;  %177 = vmatpush.msra.mxu3 %v75_v25  ;;  %76 = vmatpush.msra.mxu0 %v75_v25 }
   0x6   :  { %v117_v30 = vsub.f32 %v15_v26, %v77_v28 }
   0x7   :  { %v29_v8 = vrot.slane %v28_v6, 2  ;;  %v22_v9 = vrot.slane %v21_v7, 2  ;;  %v112_v29 = vand.u32 4294901760, %v111_v27  ;;  %147 = vmatpush.msra.mxu2 %v111_v27  ;;  %179 = vmatpush.msra.mxu3 %v77_v28 }
   0x8   :  { %78 = vmatpush.msra.mxu0 %v77_v28  ;;  %v118_v32 = vand.u32 4294901760, %v117_v30 }
   0x9   :  { %v30_v10 = vadd.f32 %v29_v8, %v28_v6  ;;  %v23_v11 = vadd.f32 %v22_v9, %v21_v7  ;;  %v113_v31 = vsub.f32 %v111_v27, %v112_v29  ;;  %150 = vmatpush.msra.mxu2 %v117_v30 }
   0xa   :  { %210 = vmatpush.msrb.mxu0 %v112_v29  ;;  %v119_v34 = vsub.f32 %v117_v30, %v118_v32 }
   0xb   :  { %v31_v12 = vrot.slane %v30_v10, 1  ;;  %v24_v13 = vrot.slane %v23_v11, 1  ;;  %v114_v33 = vand.u32 4294901760, %v113_v31 }
   0xc   :  { %214 = vmatpush.msrb.mxu0 %v118_v32  ;;  %v120_v35 = vand.u32 4294901760, %v119_v34 }
   0xd   :  { %v32_v14 = vadd.f32 %v31_v12, %v30_v10  ;;  %v25_v16 = vadd.f32 %v24_v13, %v23_v11  ;;  %115 = vmatpush.msra.mxu1 %v114_v33 }
   0xf   :  { %v37_v17 = vmul.f32 0.11111111, %v32_v14  ;;  %v38_v20 = vmul.f32 0.11111111, %v25_v16  ;;  %121 = vmatpush.msra.mxu1 %v120_v35 }
  0x11   :  { %v39_v18 = vadd.f32 %v37_v17, %v35_v15  ;;  %v40_v22 = vadd.f32 %v38_v20, %v36_v19  ;;  %239 = vmatpush.msrb.mxu1 %v75_v25 }
  0x13   :  { %v41_v21 = vmul.f32 %v39_v18, %v879_v0  ;;  %v42_v23 = vmul.f32 %v40_v22, %v884_v1  ;;  %241 = vmatpush.msrb.mxu1 %v77_v28 }
  0x15   :  { %45 = vrot.lane.b32.xlu0 %v41_v21, %s863_s10 }
  0x1d   :  { %47 = vrot.lane.b32.xlu0 %v42_v23, %s863_s10 }
  0x87   :  { %v46_v36 = vpop.permute.xlu0 %45 }
  0x88   :  { %v51_v37 = vsel %vm18_vm0, %v39_v18, %v46_v36 }
  0x89   :  { %v56_v38 = vsel %vm54_vm1, %v51_v37, 0 }
  0x8a   :  { %v79_v39 = vand.u32 4294901760, %v56_v38 }
  0x8c   :  { %v80_v40 = vsub.f32 %v56_v38, %v79_v39  ;;  %123 = vmatmul.f32.vlgmr.msra.gmra.mxu1 %v79_v39 }
  0x8e   :  { %153 = vmatmul.f32.vlgmr.msra.gmra.mxu2 %v80_v40  ;;  %v81_v41 = vand.u32 4294901760, %v80_v40 }
  0x8f   :  { %v48_v42 = vpop.permute.xlu0 %47 }
  0x90   :  { %v52_v43 = vsel %vm18_vm0, %v40_v22, %v48_v42  ;;  %183 = vmatmul.f32.vlgmr.msra.gmra.mxu3 %v81_v41  ;;  %v82_v44 = vsub.f32 %v80_v40, %v81_v41 }
  0x91   :  { %v59_v45 = vsel %vm54_vm1, %v52_v43, 0 }
  0x92   :  { %v87_v46 = vand.u32 4294901760, %v59_v45  ;;  %v83_v47 = vand.u32 4294901760, %v82_v44 }
  0x94   :  { %v88_v48 = vsub.f32 %v59_v45, %v87_v46  ;;  %84 = vmatmul.f32.vlgmr.msra.gmra.mxu0 %v83_v47  ;;  %127 = vmatmul.f32.gmra.mxu1 %v87_v46 }
  0x96   :  { %158 = vmatmul.f32.gmra.mxu2 %v88_v48  ;;  %v89_v49 = vand.u32 4294901760, %v88_v48 }
  0x98   :  { %189 = vmatmul.f32.gmra.mxu3 %v89_v49  ;;  %v90_v50 = vsub.f32 %v88_v48, %v89_v49 }
  0x9a   :  { %v91_v51 = vand.u32 4294901760, %v90_v50 }
  0x9c   :  { %92 = vmatmul.f32.gmra.mxu0 %v91_v51  ;;  %243 = vmatmul.f32.vlgmr.msrb.gmra.mxu1 %v79_v39 }
  0xa4   :  { %216 = vmatmul.f32.vlgmr.msrb.gmra.mxu0 %v79_v39  ;;  %247 = vmatmul.f32.gmra.mxu1 %v87_v46 }
  0xac   :  { %220 = vmatmul.f32.gmra.mxu0 %v87_v46 }
 0x109   :  { %v124_v52 = vpop.f32.mrf.mxu1 }
 0x111   :  { %v85_v53 = vpop.f32.mrf.mxu0  ;;  %v128_v54 = vpop.f32.mrf.mxu1 }
 0x112   :  { %v154_v55 = vpop.f32.mrf.mxu2  ;;  %v86_v60 = vadd.f32 %v839_v57, %v85_v53 }
 0x113   :  { %v184_v59 = vpop.f32.mrf.mxu3 }
 0x114   :  { %v125_v2 = vadd.f32 %v124_v52, %v86_v60 }
 0x116   :  { %v155_v5 = vadd.f32 %v154_v55, %v125_v2 }
 0x118   :  { %v185_v9 = vadd.f32 %v184_v59, %v155_v5 }
 0x119   :  { %v93_v56 = vpop.f32.mrf.mxu0  ;;  %v244_v62 = vpop.f32.mrf.mxu1 }
 0x11a   :  { %v94_v58 = vadd.f32 %v839_v57, %v93_v56  ;;  %v159_v3 = vpop.f32.mrf.mxu2 }
 0x11b   :  { %v190_v6 = vpop.f32.mrf.mxu3 }
 0x11c   :  { %v129_v61 = vadd.f32 %v128_v54, %v94_v58 }
 0x11e   :  { %v160_v4 = vadd.f32 %v159_v3, %v129_v61 }
 0x120   :  { %v191_v7 = vadd.f32 %v190_v6, %v160_v4 }
 0x121   :  { %v217_v63 = vpop.f32.mrf.mxu0  ;;  %v248_v11 = vpop.f32.mrf.mxu1 }
 0x122   :  { %v218_v12 = vadd.f32 %v217_v63, %v185_v9  ;;  %v301_v9 = vld [vmem:[%s960_s0 + $0x20] sm:$0xff] }
 0x124   :  { %v245_v15 = vadd.f32 %v244_v62, %v218_v12 }
 0x126   :  { %v253_v17 = vmul.f32 0.01, %v245_v15  ;;  %vm251_vm3 = vcmp.gt.f32.partialorder %v245_v15, 0.0 }
 0x128   :  { %v255_v18 = vsel %vm251_vm3, %v245_v15, %v253_v17 }
 0x129   :  { %v221_v8 = vpop.f32.mrf.mxu0 }
 0x12a   :  { %v222_v10 = vadd.f32 %v221_v8, %v191_v7  ;;  %v302_v7 = vld [vmem:[%s960_s0 + $0x28] sm:$0xff] }
 0x12b   :  { %v359_v8 = vand.u32 4294901760, %v302_v7 }
 0x12c   :  { %v249_v13 = vadd.f32 %v248_v11, %v222_v10  ;;  %v361_v11 = vand.u32 4294901760, %v301_v9 }
 0x12d   :  { %v395_v10 = vsub.f32 %v302_v7, %v359_v8  ;;  %461 = vmatpush.msra.mxu1 %v359_v8  ;;  %360 = vmatpush.msrb.mxu2 %v359_v8 }
 0x12e   :  { %vm252_vm2 = vcmp.gt.f32.partialorder %v249_v13, 0.0  ;;  %v254_v14 = vmul.f32 0.01, %v249_v13 }
 0x12f   :  { %v396_v12 = vand.u32 4294901760, %v395_v10  ;;  %431 = vmatpush.msra.mxu0 %v395_v10  ;;  %463 = vmatpush.msra.mxu1 %v361_v11 }
 0x130   :  { %v256_v16 = vsel %vm252_vm2, %v249_v13, %v254_v14  ;;  %v401_v13 = vsub.f32 %v301_v9, %v361_v11  ;;  %362 = vmatpush.msrb.mxu2 %v361_v11 }
 0x131   :  { %261 = vrot.lane.b32.xlu1 %v256_v16, %s864_s17  ;;  %v397_v14 = vsub.f32 %v395_v10, %v396_v12 }
 0x132   :  { %v402_v15 = vand.u32 4294901760, %v401_v13  ;;  %434 = vmatpush.msra.mxu0 %v401_v13  ;;  %494 = vmatpush.msra.mxu2 %v396_v12 }
 0x134   :  { %v403_v17 = vsub.f32 %v401_v13, %v402_v15  ;;  %498 = vmatpush.msra.mxu2 %v402_v15 }
 0x139   :  { %259 = vrot.lane.b32.xlu1 %v255_v18, %s864_s17 }
 0x1a3   :  { %v262_v19 = vpop.permute.xlu1 %261 }
 0x1a4   :  { %v266_v20 = vadd.f32 %v262_v19, %v256_v16  ;;  %v398_v16 = vand.u32 4294901760, %v397_v14 }
 0x1a6   :  { %v268_v21 = vmul.f32 %v266_v20, %v266_v20  ;;  %399 = vmatpush.msrb.mxu3 %v398_v16 }
 0x1a8   :  { %v272_v22 = vsel %vm18_vm0, %v268_v21, 0.0 }
 0x1a9   :  { %273 = vadd.xlane.f32.xlu2 %v272_v22 }
 0x1ab   :  { %v260_v23 = vpop.permute.xlu1 %259 }
 0x1ac   :  { %v265_v24 = vadd.f32 %v260_v23, %v255_v18  ;;  %v404_v18 = vand.u32 4294901760, %v403_v17  ;;  %v865_v17 = vmov 8.0  }
 0x1ae   :  { %v267_v25 = vmul.f32 %v265_v24, %v265_v24  ;;  %405 = vmatpush.msrb.mxu3 %v404_v18 }
 0x1b0   :  { %v269_v26 = vsel %vm18_vm0, %v267_v25, 0.0  ;;  %523 = vmatpush.msra.mxu3 %v359_v8 }
 0x1b1   :  { %270 = vadd.xlane.f32.xlu2 %v269_v26 }
 0x1b2   :  { %525 = vmatpush.msra.mxu3 %v361_v11 }
 0x21c   :  { %v274_v27 = vpop.xlane.xlu2 %273 }
 0x21d   :  { %v276_v28 = vmax.f32 %v274_v27, 1e-24 }
 0x21f   :  { %841 = vrsqrt.f32 %v276_v28  ;;  %vm293_vm5 = vweird.f32 %v276_v28 }
 0x224   :  { %v271_v29 = vpop.xlane.xlu2 %270 }
 0x225   :  { %v842_v30 = vpop.eup %841  ;;  %v275_v31 = vmax.f32 %v271_v29, 1e-24 }
 0x226   :  { %v288_v32 = vmul.f32 %v842_v30, %v276_v28  ;;  %vm294_vm4 = vweird.f32 %v842_v30 }
 0x227   :  { %843 = vrsqrt.f32 %v275_v31  ;;  %vm295_vm6 = vmor %vm293_vm5, %vm294_vm4  ;;  %vm283_vm8 = vweird.f32 %v275_v31 }
 0x228   :  { %v289_v33 = vmul.f32 %v842_v30, %v288_v32 }
 0x22a   :  { %v290_v34 = vmul.f32 0.5, %v289_v33 }
 0x22c   :  { %v291_v35 = vsub.f32 1.5, %v290_v34 }
 0x22d   :  { %v844_v36 = vpop.eup %843 }
 0x22e   :  { %v292_v37 = vmul.f32 %v842_v30, %v291_v35  ;;  %v278_v38 = vmul.f32 %v844_v36, %v275_v31  ;;  %vm284_vm7 = vweird.f32 %v844_v36 }
 0x22f   :  { %vm285_vm9 = vmor %vm283_vm8, %vm284_vm7  ;;  %vm806_vm8 = vcmask 58368  }
 0x230   :  { %v296_v39 = vsel %vm295_vm6, %v842_v30, %v292_v37  ;;  %v279_v40 = vmul.f32 %v844_v36, %v278_v38 }
 0x231   :  { %v913_v41 = vmul.f32 %v296_v39, %v266_v20 }
 0x232   :  { %v280_v42 = vmul.f32 0.5, %v279_v40 }
 0x233   :  { %v311_v43 = vsel %vm18_vm0, %v913_v41, 0.0  ;;  %v321_v3 = vmul.f32 0.11111111, %v913_v41 }
 0x234   :  { %v281_v44 = vsub.f32 1.5, %v280_v42  ;;  %v312_v45 = vrot.slane %v311_v43, 4 }
 0x236   :  { %v282_v46 = vmul.f32 %v844_v36, %v281_v44  ;;  %v313_v47 = vadd.f32 %v312_v45, %v311_v43 }
 0x238   :  { %v286_v48 = vsel %vm285_vm9, %v844_v36, %v282_v46  ;;  %v314_v49 = vrot.slane %v313_v47, 2  ;;  %v840_v36 = vld [vmem:[%s960_s0 + $0x31] ss:$0 sm:$0xff]  ;;  %vm810_vm9 = vcmask 1041408  }
 0x239   :  { %v917_v50 = vmul.f32 %v286_v48, %v265_v24 }
 0x23a   :  { %v315_v51 = vadd.f32 %v314_v49, %v313_v47 }
 0x23b   :  { %v304_v52 = vsel %vm18_vm0, %v917_v50, 0.0  ;;  %v320_v57 = vmul.f32 0.11111111, %v917_v50 }
 0x23c   :  { %v316_v53 = vrot.slane %v315_v51, 1  ;;  %v305_v54 = vrot.slane %v304_v52, 4 }
 0x23e   :  { %v317_v55 = vadd.f32 %v316_v53, %v315_v51  ;;  %v306_v56 = vadd.f32 %v305_v54, %v304_v52 }
 0x240   :  { %v322_v58 = vmul.f32 0.11111111, %v317_v55  ;;  %v307_v59 = vrot.slane %v306_v56, 2 }
 0x242   :  { %v324_v60 = vadd.f32 %v322_v58, %v320_v57  ;;  %v308_v61 = vadd.f32 %v307_v59, %v306_v56 }
 0x244   :  { %v326_v62 = vmul.f32 %v324_v60, %v917_v50  ;;  %v309_v63 = vrot.slane %v308_v61, 1 }
 0x246   :  { %330 = vrot.lane.b32.xlu0 %v326_v62, %s863_s10  ;;  %v310_v2 = vadd.f32 %v309_v63, %v308_v61 }
 0x248   :  { %v323_v4 = vmul.f32 0.11111111, %v310_v2 }
 0x24a   :  { %v325_v5 = vadd.f32 %v323_v4, %v321_v3 }
 0x24c   :  { %v327_v6 = vmul.f32 %v325_v5, %v913_v41 }
 0x24e   :  { %332 = vrot.lane.b32.xlu1 %v327_v6, %s863_s10 }
 0x2b8   :  { %v331_v19 = vpop.permute.xlu0 %330 }
 0x2b9   :  { %v336_v20 = vsel %vm18_vm0, %v324_v60, %v331_v19 }
 0x2ba   :  { %v340_v21 = vsel %vm54_vm1, %v336_v20, 0 }
 0x2bb   :  { %v363_v22 = vand.u32 4294901760, %v340_v21 }
 0x2bd   :  { %v364_v23 = vsub.f32 %v340_v21, %v363_v22  ;;  %407 = vmatmul.f32.vlgmr.msrb.gmra.mxu3 %v363_v22 }
 0x2bf   :  { %437 = vmatmul.f32.vlgmr.msra.gmra.mxu0 %v364_v23  ;;  %v365_v24 = vand.u32 4294901760, %v364_v23 }
 0x2c0   :  { %v333_v25 = vpop.permute.xlu1 %332 }
 0x2c1   :  { %v337_v26 = vsel %vm18_vm0, %v325_v5, %v333_v25  ;;  %467 = vmatmul.f32.vlgmr.msra.gmra.mxu1 %v365_v24  ;;  %v366_v27 = vsub.f32 %v364_v23, %v365_v24  ;;  %v299_v23 = vadd.f32 %v917_v50, %v879_v0 }
 0x2c2   :  { %v343_v28 = vsel %vm54_vm1, %v337_v26, 0 }
 0x2c3   :  { %v371_v29 = vand.u32 4294901760, %v343_v28  ;;  %v367_v30 = vand.u32 4294901760, %v366_v27 }
 0x2c5   :  { %v372_v31 = vsub.f32 %v343_v28, %v371_v29  ;;  %368 = vmatmul.f32.vlgmr.msrb.gmra.mxu2 %v367_v30  ;;  %411 = vmatmul.f32.gmra.mxu3 %v371_v29 }
 0x2c7   :  { %442 = vmatmul.f32.gmra.mxu0 %v372_v31  ;;  %v373_v32 = vand.u32 4294901760, %v372_v31 }
 0x2c9   :  { %473 = vmatmul.f32.gmra.mxu1 %v373_v32  ;;  %v374_v33 = vsub.f32 %v372_v31, %v373_v32 }
 0x2cb   :  { %v375_v34 = vand.u32 4294901760, %v374_v33 }
 0x2cd   :  { %376 = vmatmul.f32.gmra.mxu2 %v375_v34  ;;  %527 = vmatmul.f32.vlgmr.msra.gmra.mxu3 %v363_v22 }
 0x2d5   :  { %500 = vmatmul.f32.vlgmr.msra.gmra.mxu2 %v363_v22  ;;  %531 = vmatmul.f32.gmra.mxu3 %v371_v29 }
 0x2dd   :  { %504 = vmatmul.f32.gmra.mxu2 %v371_v29 }
 0x33c   :  { %v438_v42 = vpop.f32.mrf.mxu0 }
 0x33e   :  { %v468_v46 = vpop.f32.mrf.mxu1 }
 0x340   :  { %v408_v35 = vpop.f32.mrf.mxu3 }
 0x344   :  { %v443_v53 = vpop.f32.mrf.mxu0 }
 0x346   :  { %v474_v57 = vpop.f32.mrf.mxu1 }
 0x348   :  { %v369_v37 = vpop.f32.mrf.mxu2  ;;  %v412_v39 = vpop.f32.mrf.mxu3 }
 0x349   :  { %v370_v38 = vadd.f32 %v840_v36, %v369_v37 }
 0x34b   :  { %v409_v40 = vadd.f32 %v408_v35, %v370_v38 }
 0x34d   :  { %v439_v45 = vadd.f32 %v438_v42, %v409_v40 }
 0x34f   :  { %v469_v48 = vadd.f32 %v468_v46, %v439_v45 }
 0x350   :  { %v377_v43 = vpop.f32.mrf.mxu2  ;;  %v528_v49 = vpop.f32.mrf.mxu3 }
 0x351   :  { %v378_v44 = vadd.f32 %v840_v36, %v377_v43 }
 0x353   :  { %v413_v47 = vadd.f32 %v412_v39, %v378_v44 }
 0x355   :  { %v444_v55 = vadd.f32 %v443_v53, %v413_v47 }
 0x357   :  { %v475_v58 = vadd.f32 %v474_v57, %v444_v55 }
 0x358   :  { %v501_v51 = vpop.f32.mrf.mxu2  ;;  %v532_v62 = vpop.f32.mrf.mxu3 }
 0x359   :  { %v502_v52 = vadd.f32 %v501_v51, %v469_v48 }
 0x35b   :  { %v529_v54 = vadd.f32 %v528_v49, %v502_v52  ;;  %v300_v52 = vadd.f32 %v913_v41, %v884_v1 }
 0x35d   :  { %vm535_vm10 = vcmp.gt.f32.partialorder %v529_v54, 0.0  ;;  %v537_v56 = vmul.f32 0.01, %v529_v54 }
 0x35f   :  { %v539_v59 = vsel %vm535_vm10, %v529_v54, %v537_v56 }
 0x360   :  { %v505_v60 = vpop.f32.mrf.mxu2  ;;  %543 = vrot.lane.b32.xlu2 %v539_v59, %s864_s17 }
 0x361   :  { %v506_v61 = vadd.f32 %v505_v60, %v475_v58 }
 0x363   :  { %v533_v63 = vadd.f32 %v532_v62, %v506_v61 }
 0x365   :  { %vm536_vm11 = vcmp.gt.f32.partialorder %v533_v63, 0.0  ;;  %v538_v2 = vmul.f32 0.01, %v533_v63 }
 0x367   :  { %v540_v3 = vsel %vm536_vm11, %v533_v63, %v538_v2 }
 0x368   :  { %545 = vrot.lane.b32.xlu0 %v540_v3, %s864_s17 }
 0x3ba   :  { %v544_v4 = vpop.permute.xlu2 %543 }
 0x3bb   :  { %v549_v5 = vadd.f32 %v544_v4, %v539_v59 }
 0x3bd   :  { %v551_v6 = vmul.f32 %v549_v5, %v549_v5 }
 0x3bf   :  { %v553_v7 = vsel %vm18_vm0, %v551_v6, 0.0 }
 0x3c0   :  { %554 = vadd.xlane.f32.xlu1 %v553_v7 }
 0x3da   :  { %v546_v8 = vpop.permute.xlu0 %545 }
 0x3db   :  { %v550_v9 = vadd.f32 %v546_v8, %v540_v3 }
 0x3dd   :  { %v552_v10 = vmul.f32 %v550_v9, %v550_v9 }
 0x3df   :  { %v556_v11 = vsel %vm18_vm0, %v552_v10, 0.0 }
 0x3e0   :  { %557 = vadd.xlane.f32.xlu0 %v556_v11 }
 0x433   :  { %v555_v12 = vpop.xlane.xlu1 %554 }
 0x434   :  { %v559_v13 = vmax.f32 %v555_v12, 1e-24 }
 0x436   :  { %845 = vrsqrt.f32 %v559_v13  ;;  %vm567_vm13 = vweird.f32 %v559_v13 }
 0x437   :  { %847 = vrcp.f32 %v865_v17 }
 0x43c   :  { %v846_v14 = vpop.eup %845 }
 0x43d   :  { %v562_v15 = vmul.f32 %v846_v14, %v559_v13  ;;  %vm568_vm12 = vweird.f32 %v846_v14  ;;  %v848_v20 = vpop.eup %847 }
 0x43e   :  { %vm569_vm14 = vmor %vm567_vm13, %vm568_vm12  ;;  %v595_v25 = vmul.f32 8.0, %v848_v20  ;;  %vm599_vm15 = vweird.f32 %v848_v20 }
 0x43f   :  { %v563_v16 = vmul.f32 %v846_v14, %v562_v15 }
 0x440   :  { %v596_v28 = vsub.f32 1.0, %v595_v25 }
 0x441   :  { %v564_v18 = vmul.f32 0.5, %v563_v16 }
 0x442   :  { %v597_v31 = vmul.f32 %v848_v20, %v596_v28 }
 0x443   :  { %v565_v19 = vsub.f32 1.5, %v564_v18 }
 0x444   :  { %v598_v36 = vadd.f32 %v848_v20, %v597_v31 }
 0x445   :  { %v566_v21 = vmul.f32 %v846_v14, %v565_v19 }
 0x446   :  { %v600_v39 = vsel %vm599_vm15, %v848_v20, %v598_v36  ;;  %vm826_vm15 = vcmask 1042432  }
 0x447   :  { %v570_v22 = vsel %vm569_vm14, %v846_v14, %v566_v21  ;;  %vm823_vm14 = vcmask 1040384  }
 0x448   :  { %v581_v24 = vmul.f32 %v570_v22, %v549_v5 }
 0x44a   :  { %v583_v26 = vadd.f32 %v581_v24, %v299_v23 }
 0x44c   :  { %v585_v27 = vmul.f32 0.33333334, %v583_v26 }
 0x44e   :  { %v587_v29 = vsel %vm18_vm0, %v585_v27, 0.0 }
 0x44f   :  { %v588_v30 = vrot.slane %v587_v29, 4 }
 0x451   :  { %v589_v32 = vadd.f32 %v588_v30, %v587_v29  ;;  %v792_v29 = vld [vmem:[%s960_s0 + $0x32] sm:$0x3] }
 0x453   :  { %v590_v33 = vrot.slane %v589_v32, 2  ;;  %v558_v34 = vpop.xlane.xlu0 %557 }
 0x454   :  { %v560_v35 = vmax.f32 %v558_v34, 1e-24  ;;  %v802_v34 = vsub.f32 1.0, %v792_v29 }
 0x455   :  { %v591_v37 = vadd.f32 %v590_v33, %v589_v32 }
 0x456   :  { %849 = vrsqrt.f32 %v560_v35  ;;  %vm577_vm2 = vweird.f32 %v560_v35 }
 0x457   :  { %v592_v38 = vrot.slane %v591_v37, 1 }
 0x459   :  { %v593_v0 = vadd.f32 %v592_v38, %v591_v37 }
 0x45b   :  { %v601_v50 = vmul.f32 %v600_v39, %v593_v0 }
 0x45c   :  { %v850_v40 = vpop.eup %849 }
 0x45d   :  { %v572_v42 = vmul.f32 %v850_v40, %v560_v35  ;;  %v603_v44 = vsel %vm18_vm0, %v601_v50, 0  ;;  %vm578_vm1 = vweird.f32 %v850_v40 }
 0x45e   :  { %v625_v46 = vand.u32 4294901760, %v603_v44  ;;  %vm579_vm3 = vmor %vm577_vm2, %vm578_vm1 }
 0x45f   :  { %v573_v43 = vmul.f32 %v850_v40, %v572_v42 }
 0x460   :  { %v626_v49 = vsub.f32 %v603_v44, %v625_v46 }
 0x461   :  { %v574_v45 = vmul.f32 0.5, %v573_v43 }
 0x462   :  { %v627_v55 = vand.u32 4294901760, %v626_v49 }
 0x463   :  { %v575_v47 = vsub.f32 1.5, %v574_v45 }
 0x464   :  { %v628_v58 = vsub.f32 %v626_v49, %v627_v55 }
 0x465   :  { %v576_v48 = vmul.f32 %v850_v40, %v575_v47 }
 0x466   :  { %v629_v61 = vand.u32 4294901760, %v628_v58 }
 0x467   :  { %v580_v51 = vsel %vm579_vm3, %v850_v40, %v576_v48 }
 0x468   :  { %v582_v53 = vmul.f32 %v580_v51, %v550_v9 }
 0x46a   :  { %v584_v54 = vadd.f32 %v582_v53, %v300_v52 }
 0x46c   :  { %v586_v56 = vmul.f32 0.33333334, %v584_v54 }
 0x46e   :  { %v606_v57 = vsel %vm18_vm0, %v586_v56, 0 }
 0x46f   :  { %v623_v59 = vand.u32 4294901760, %v606_v57 }
 0x471   :  { %624 = vmatpush.xpose.msrb.mxu0 %v623_v59  ;;  %700 = vmatpush.xpose.msrb.mxu3 %v623_v59  ;;  %v650_v60 = vsub.f32 %v606_v57, %v623_v59 }
 0x473   :  { %677 = vmatpush.xpose.msrb.mxu2 %v650_v60  ;;  %v651_v62 = vand.u32 4294901760, %v650_v60 }
 0x474   :  { %630 = vmatmul.f32.vlgmr.msrb.gmra.mxu0 %v629_v61  ;;  %704 = vmatmul.f32.vlgmr.msrb.gmra.mxu3 %v627_v55 }
 0x475   :  { %726 = vmatpush.xpose.msra.mxu0 %v651_v62  ;;  %v652_v63 = vsub.f32 %v650_v60, %v651_v62 }
 0x476   :  { %680 = vmatmul.f32.vlgmr.msrb.gmra.mxu2 %v626_v49 }
 0x477   :  { %v653_v1 = vand.u32 4294901760, %v652_v63 }
 0x479   :  { %654 = vmatpush.xpose.msrb.mxu1 %v653_v1 }
 0x47c   :  { %656 = vmatmul.f32.vlgmr.msrb.gmra.mxu1 %v625_v46  ;;  %728 = vmatmul.f32.vlgmr.msra.gmra.mxu0 %v625_v46 }
 0x47d   :  { %748 = vmatpush.xpose.msra.mxu1 %v623_v59 }
 0x484   :  { %750 = vmatmul.f32.vlgmr.msra.gmra.mxu1 %v625_v46 }
 0x4f1   :  { %v631_v41 = vpop.f32.mrf.mxu0 }
 0x4f7   :  { %v705_v6 = vpop.f32.mrf.mxu3 }
 0x4f9   :  { %v657_v2 = vpop.f32.mrf.mxu1  ;;  %v681_v4 = vpop.f32.mrf.mxu2 }
 0x4fa   :  { %v658_v3 = vadd.f32 %v657_v2, %v631_v41  ;;  %v729_v8 = vpop.f32.mrf.mxu0 }
 0x4fc   :  { %v682_v5 = vadd.f32 %v681_v4, %v658_v3 }
 0x4fe   :  { %v706_v7 = vadd.f32 %v705_v6, %v682_v5 }
 0x500   :  { %v730_v9 = vadd.f32 %v729_v8, %v706_v7 }
 0x501   :  { %v751_v10 = vpop.f32.mrf.mxu1 }
 0x502   :  { %v752_v11 = vadd.f32 %v751_v10, %v730_v9 }
 0x504   :  { %v834_v12 = vmul.f32 -1.442695, %v752_v11 }
 0x506   :  { %851 = vpow2.f32 %v834_v12 }
 0x50c   :  { %v852_v13 = vpop.eup %851 }
 0x50d   :  { %v757_v14 = vadd.f32 1.0, %v852_v13 }
 0x50f   :  { %853 = vrcp.f32 %v757_v14  ;;  %v769_v18 = vand.u32 2147483648, %v757_v14  ;;  %v767_v20 = vand.u32 2147483647, %v757_v14  ;;  %vm763_vm5 = vweird.f32 %v757_v14 }
 0x511   :  { %v770_v22 = vor.u32 1.1754944e-38, %v769_v18  ;;  %vm768_vm7 = vcmp.eq.f32.partialorder %v767_v20, 8.507059e+37 }
 0x515   :  { %v854_v15 = vpop.eup %853 }
 0x516   :  { %v759_v16 = vmul.f32 %v854_v15, %v757_v14  ;;  %vm764_vm4 = vweird.f32 %v854_v15 }
 0x517   :  { %vm765_vm6 = vmor %vm763_vm5, %vm764_vm4 }
 0x518   :  { %v760_v17 = vsub.f32 1.0, %v759_v16 }
 0x51a   :  { %v761_v19 = vmul.f32 %v854_v15, %v760_v17 }
 0x51c   :  { %v762_v21 = vadd.f32 %v854_v15, %v761_v19 }
 0x51e   :  { %v766_v23 = vsel %vm765_vm6, %v854_v15, %v762_v21 }
 0x51f   :  { %v771_v24 = vsel %vm768_vm7, %v770_v22, %v766_v23 }
 0x520   :  { %855 = vlog2.f32 %v771_v24  ;;  %v796_v25 = vsub.f32 1.0, %v771_v24  ;;  %v835_v0 = vmul.f32 -1.442695, %v771_v24 }
 0x522   :  { %857 = vlog2.f32 %v796_v25 }
 0x523   :  { %859 = vpow2.f32 %v835_v0 }
 0x526   :  { %v856_v26 = vpop.eup %855 }
 0x527   :  { %v794_v27 = vmul.f32 0.6931472, %v856_v26 }
 0x528   :  { %v858_v28 = vpop.eup %857 }
 0x529   :  { %v795_v30 = vmax.f32 %v794_v27, -100.0  ;;  %v798_v31 = vmul.f32 0.6931472, %v858_v28  ;;  %v860_v50 = vpop.eup %859 }
 0x52a   :  { %v776_v40 = vadd.f32 1.0, %v860_v50 }
 0x52b   :  { %v799_v32 = vmax.f32 %v798_v31, -100.0  ;;  %v800_v33 = vperm.slane %v795_v30, 0 }
 0x52c   :  { %861 = vrcp.f32 %v776_v40  ;;  %v788_v51 = vand.u32 2147483648, %v776_v40  ;;  %vm782_vm11 = vweird.f32 %v776_v40  ;;  %v786_v53 = vand.u32 2147483647, %v776_v40 }
 0x52d   :  { %v803_v35 = vperm.slane %v799_v32, 0  ;;  %v801_v36 = vmul.f32 %v800_v33, %v792_v29 }
 0x52e   :  { %v789_v56 = vor.u32 1.1754944e-38, %v788_v51  ;;  %vm787_vm13 = vcmp.eq.f32.partialorder %v786_v53, 8.507059e+37 }
 0x52f   :  { %v804_v37 = vmul.f32 %v803_v35, %v802_v34 }
 0x531   :  { %v805_v38 = vadd.f32 %v804_v37, %v801_v36 }
 0x532   :  { %v862_v42 = vpop.eup %861 }
 0x533   :  { %v807_v39 = vsel %vm806_vm8, %v805_v38, 0.0  ;;  %v778_v43 = vmul.f32 %v862_v42, %v776_v40  ;;  %vm783_vm10 = vweird.f32 %v862_v42 }
 0x534   :  { %808 = vadd.xlane.f32.xlu2 %v807_v39  ;;  %vm784_vm12 = vmor %vm782_vm11, %vm783_vm10 }
 0x535   :  { %v779_v44 = vsub.f32 1.0, %v778_v43 }
 0x537   :  { %v780_v45 = vmul.f32 %v862_v42, %v779_v44 }
 0x539   :  { %v781_v49 = vadd.f32 %v862_v42, %v780_v45 }
 0x53b   :  { %v785_v55 = vsel %vm784_vm12, %v862_v42, %v781_v49 }
 0x53c   :  { %v790_v58 = vsel %vm787_vm13, %v789_v56, %v785_v55 }
 0x53d   :  { %v821_v61 = vrot.slane %v790_v58, 7 }
 0x53f   :  { %v824_v1 = vsel %vm823_vm14, %v771_v24, %v821_v61 }
 0x5a7   :  { %v809_v46 = vpop.xlane.xlu2 %808 }
 0x5a8   :  { %v811_v47 = vsel %vm810_vm9, %v809_v46, 0.0 }
 0x5a9   :  { %v812_v48 = vrot.slane %v811_v47, 4 }
 0x5ab   :  { %v813_v52 = vadd.f32 %v812_v48, %v811_v47 }
 0x5ad   :  { %v814_v54 = vrot.slane %v813_v52, 2 }
 0x5af   :  { %v815_v57 = vadd.f32 %v814_v54, %v813_v52 }
 0x5b1   :  { %v816_v59 = vrot.slane %v815_v57, 1 }
 0x5b3   :  { %v817_v60 = vadd.f32 %v816_v59, %v815_v57 }
 0x5b5   :  { %v818_v62 = vsub.f32 0.0, %v817_v60 }
 0x5b7   :  { %v819_v63 = vmul.f32 0.0625, %v818_v62 }
 0x5b9   :  { %v825_v41 = vsel %vm810_vm9, %v824_v1, %v819_v63 }
 0x5ba   :  { %v827_v2 = vsel %vm826_vm15, %v825_v41, 0.0 }
 0x5bb   :  { %v828_v3 = vsel %vm18_vm0, %v827_v2, 0.0 }
 0x5bc   :  { %829 = vst [vmem:[%s961_s1] sm:$0xff] %v828_v3 }

</bundles_post_ra>
